<compile_context>
chip_gen: v6e
topology: v6e:2x2x1
jax: 0.10.0
libtpu: 0.0.40
codegen_flags: <defaults>
</compile_context>

<pallas_src>
import functools

import jax
import jax.numpy as jnp
from jax.experimental import pallas as pl
from jax.experimental.pallas import tpu as pltpu


# ---------------------------------------------------------------------------
# Small helpers
# ---------------------------------------------------------------------------

def _round_up(x, m):
    return ((x + m - 1) // m) * m


def _stack_cols(a, b):
    """Stack two (C, 1) columns into a (C, 2) matrix without concatenate."""
    col = jax.lax.broadcasted_iota(jnp.int32, (a.shape[0], 2), 1)
    return jnp.where(col == 0, a, b)


def _gate_from_pooled(avg, mx, w1, w2, a):
    """Shared FC: stacked matmul -> PReLU -> matmul -> sigmoid gate (C, 1).

    Intentionally simple: these matmuls pad to MXU tiles at <1% utilization,
    but the FLOPs are trivial and run once per batch behind the reduction.
    """
    pooled = _stack_cols(avg, mx)                                   # (C, 2) f32
    h = jnp.dot(w1, pooled, preferred_element_type=jnp.float32)     # (Cr, 2)
    h = jnp.where(h >= 0, h, a * h)                                 # PReLU
    y = jnp.dot(w2, h, preferred_element_type=jnp.float32)          # (C, 2)
    return jax.nn.sigmoid(y[:, 0:1] + y[:, 1:2])                    # (C, 1)


def _gated_mul(x, gate_f32):
    """x * gate.  Input-dtype math for >=16-bit dtypes; f32 math for narrower
    (fp8/int8) inputs so the [0,1] gate is not quantized before the multiply."""
    if jnp.dtype(x.dtype).itemsize < 2:
        return (x.astype(jnp.float32) * gate_f32).astype(x.dtype)
    return x * gate_f32.astype(x.dtype)


# ---------------------------------------------------------------------------
# Kernels
# ---------------------------------------------------------------------------

def _fused_kernel(x_ref, w1_ref, a_ref, w2_ref, o_ref, *, inv_hw):
    # x_ref : (C, HW)   VMEM, input dtype (batch dim squeezed)
    # w1_ref: (Cr, C)   VMEM  (PyTorch Linear(C, Cr).weight layout)
    # a_ref : (1, 1)    SMEM  (PReLU slope)
    # w2_ref: (C, Cr)   VMEM  (PyTorch Linear(Cr, C).weight layout)
    # o_ref : (C, HW)   VMEM, aliased onto x in HBM
    x = x_ref[...]                                                   # input dtype
    avg = jnp.sum(x, axis=-1, keepdims=True, dtype=jnp.float32) * inv_hw
    mx = jnp.max(x, axis=-1, keepdims=True).astype(jnp.float32)
    gate = _gate_from_pooled(avg, mx,
                             w1_ref[...].astype(jnp.float32),
                             w2_ref[...].astype(jnp.float32),
                             a_ref[0, 0])                            # (C, 1) f32
    o_ref[...] = _gated_mul(x, gate)                                 # lane broadcast


def _pool_gate_kernel(x_ref, w1_ref, a_ref, w2_ref, gate_ref,
                      sum_acc, max_acc, *, inv_hw, hw, tile_hw, mask_last):
    # Pass A: reduce over HW tiles (grid axis 1, "arbitrary"), emit gate (C, 1).
    k = pl.program_id(1)

    @pl.when(k == 0)
    def _():
        sum_acc[...] = jnp.zeros_like(sum_acc)
        max_acc[...] = jnp.full_like(max_acc, -jnp.inf)

    x = x_ref[...]                                                   # (C, tile_hw)
    if mask_last:
        # cdiv grid: the last tile reads past HW; mask padding lanes
        # (0 for the sum, -inf for the max).
        xf = x.astype(jnp.float32)
        lane = jax.lax.broadcasted_iota(jnp.int32, xf.shape, 1)
        valid = (k * tile_hw + lane) < hw
        sum_acc[...] += jnp.sum(jnp.where(valid, xf, 0.0),
                                axis=-1, keepdims=True)
        max_acc[...] = jnp.maximum(
            max_acc[...],
            jnp.max(jnp.where(valid, xf, -jnp.inf), axis=-1, keepdims=True))
    else:
        sum_acc[...] += jnp.sum(x, axis=-1, keepdims=True, dtype=jnp.float32)
        max_acc[...] = jnp.maximum(
            max_acc[...],
            jnp.max(x, axis=-1, keepdims=True).astype(jnp.float32))

    @pl.when(k == pl.num_programs(1) - 1)
    def _():
        avg = sum_acc[...] * inv_hw                                  # true-HW divisor
        gate_ref[...] = _gate_from_pooled(
            avg, max_acc[...],
            w1_ref[...].astype(jnp.float32),
            w2_ref[...].astype(jnp.float32),
            a_ref[0, 0])


def _apply_kernel(x_ref, gate_ref, o_ref):
    # Pass B: o = x * gate.  No masking needed: Pallas clips the writeback of
    # the partial last tile, so garbage lanes never reach HBM.
    o_ref[...] = _gated_mul(x_ref[...], gate_ref[...])


# ---------------------------------------------------------------------------
# VMEM policy (generation-aware)
# ---------------------------------------------------------------------------

_FALLBACK_VMEM_CAPACITY = 64 * 1024 * 1024   # v7x-safe if the query fails


def _vmem_budgets():
    """Derive budgets from the chip's physical VMEM (128 MiB v5e/v6e, 64 MiB v7x)."""
    try:
        cap = int(pltpu.get_tpu_info().vmem_capacity_bytes)
        if cap <= 0:
            raise ValueError("bad vmem capacity")
    except Exception:  # defensive: interpret mode / older jax
        cap = _FALLBACK_VMEM_CAPACITY
    vmem_limit = (cap * 7) // 8        # ~112 MiB on v5e/v6e, ~56 MiB on v7x
    fused_budget = vmem_limit // 5     # fused footprint ~4x slab (2 in + 2 out) + weights
    block_budget = vmem_limit // 8     # two-pass per-block soft budget
    return vmem_limit, fused_budget, block_budget


def _pick_tile_hw(hw, c, itemsize, block_budget, vmem_limit):
    """Lane-dense HW tile: multiple of 128, prefer 512-2048 lanes, cdiv grid."""
    hw_pad = _round_up(hw, 128)
    row_bytes = max(1, c * itemsize)
    by_budget = max(128, (block_budget // row_bytes) // 128 * 128)
    # Hard cap: ~4 live blocks (2 in + 2 out double buffers) must stay well
    # under the scoped VMEM limit.
    hard_cap = max(128, (vmem_limit // (8 * row_bytes)) // 128 * 128)
    tile = max(by_budget, min(512, hard_cap))      # enforce >=512 lanes when safe
    tile = min(tile, hard_cap, 2048, hw_pad)
    return max(128, tile)


# ---------------------------------------------------------------------------
# Wrapper
# ---------------------------------------------------------------------------

def channel_attention(x, w1, prelu_a, w2, *, block_budget_bytes=None):
    """ChannelAttention forward.

    x: (B, C, H, W); w1: (C//r, C) = first nn.Linear weight (PyTorch (out,in));
    w2: (C, C//r) = second nn.Linear weight; prelu_a: scalar PReLU slope.
    block_budget_bytes: optional override (mainly for tests) of both the
    fused-path slab threshold and the two-pass per-block budget.
    """
    B, C, H, W = x.shape
    Cr = w1.shape[0]
    HW = H * W
    xv = x.reshape(B, C, HW)
    a2d = jnp.asarray(prelu_a, jnp.float32).reshape(1, 1)
    itemsize = jnp.dtype(x.dtype).itemsize
    slab_bytes = C * HW * itemsize

    vmem_limit, fused_budget, block_budget = _vmem_budgets()
    if block_budget_bytes is not None:
        fused_budget = block_budget_bytes
        block_budget = block_budget_bytes

    if slab_bytes <= fused_budget:
        # Fused path: whole per-batch slab resident, 1R + 1W of x; batch axis
        # "parallel" (pipelines across batches, shards across v7x's 2 cores).
        # TODO(synk): for B == 1 with multi-MiB slabs the reduce+multiply is
        # exposed after the input DMA; an inner HW pipeline (emit_pipeline into
        # a resident slab) would hide it without giving up 1R+1W traffic.
        out = pl.pallas_call(
            functools.partial(_fused_kernel, inv_hw=1.0 / HW),
            out_shape=jax.ShapeDtypeStruct((B, C, HW), x.dtype),
            grid=(B,),
            in_specs=[
                pl.BlockSpec((pl.Squeezed(), C, HW), lambda b: (b, 0, 0)),
                pl.BlockSpec((Cr, C), lambda b: (0, 0)),
                pl.BlockSpec(memory_space=pltpu.MemorySpace.SMEM),
                pl.BlockSpec((C, Cr), lambda b: (0, 0)),
            ],
            out_specs=pl.BlockSpec((pl.Squeezed(), C, HW), lambda b: (b, 0, 0)),
            input_output_aliases={0: 0},
            compiler_params=pltpu.CompilerParams(
                dimension_semantics=("parallel",),
                vmem_limit_bytes=vmem_limit),
        )(xv, w1, a2d, w2)
        return out.reshape(B, C, H, W)

    # Two-pass path for large spatial extents: pass A pools + emits the gate,
    # pass B applies it in place.  HW grid uses cdiv + a masked last tile.
    tile_hw = _pick_tile_hw(HW, C, itemsize, block_budget, vmem_limit)
    K = pl.cdiv(HW, tile_hw)
    mask_last = (HW % tile_hw) != 0

    # TODO(synk): on v7x with B == 1 pass A occupies only one TensorCore; split
    # the HW reduction over a second "parallel" axis (partial sum/max combined
    # before the FC) to use both cores' HBM bandwidth on the pooling read.
    gate = pl.pallas_call(
        functools.partial(_pool_gate_kernel, inv_hw=1.0 / HW, hw=HW,
                          tile_hw=tile_hw, mask_last=mask_last),
        out_shape=jax.ShapeDtypeStruct((B, C, 1), jnp.float32),
        grid=(B, K),
        in_specs=[
            pl.BlockSpec((pl.Squeezed(), C, tile_hw), lambda b, k: (b, 0, k)),
            pl.BlockSpec((Cr, C), lambda b, k: (0, 0)),
            pl.BlockSpec(memory_space=pltpu.MemorySpace.SMEM),
            pl.BlockSpec((C, Cr), lambda b, k: (0, 0)),
        ],
        out_specs=pl.BlockSpec((pl.Squeezed(), C, 1), lambda b, k: (b, 0, 0)),
        scratch_shapes=[pltpu.VMEM((C, 1), jnp.float32),
                        pltpu.VMEM((C, 1), jnp.float32)],
        compiler_params=pltpu.CompilerParams(
            dimension_semantics=("parallel", "arbitrary"),
            vmem_limit_bytes=vmem_limit),
    )(xv, w1, a2d, w2)

    out = pl.pallas_call(
        _apply_kernel,
        out_shape=jax.ShapeDtypeStruct((B, C, HW), x.dtype),
        grid=(B, K),
        in_specs=[
            pl.BlockSpec((pl.Squeezed(), C, tile_hw), lambda b, k: (b, 0, k)),
            pl.BlockSpec((pl.Squeezed(), C, 1), lambda b, k: (b, 0, 0)),
        ],
        out_specs=pl.BlockSpec((pl.Squeezed(), C, tile_hw), lambda b, k: (b, 0, k)),
        input_output_aliases={0: 0},
        compiler_params=pltpu.CompilerParams(
            dimension_semantics=("parallel", "parallel"),
            vmem_limit_bytes=vmem_limit),
    )(xv, gate)
    return out.reshape(B, C, H, W)


# ---------------------------------------------------------------------------
# Reference + test
# ---------------------------------------------------------------------------

def _reference(x, w1, prelu_a, w2):
    avg = jnp.mean(x, axis=(2, 3))
    mx = jnp.max(x, axis=(2, 3))

    def fc(v):
        h = v @ w1.T
        h = jnp.where(h >= 0, h, prelu_a * h)
        return h @ w2.T

    gate = jax.nn.sigmoid(fc(avg) + fc(mx))
    return x * gate[:, :, None, None]


if __name__ == "__main__":
    key = jax.random.PRNGKey(0)
    kx, k1, k2, kx2 = jax.random.split(key, 4)
    prelu_a = jnp.float32(0.25)   # nn.PReLU() default single parameter

    # Case 1: module defaults (in_channels=32, reduction=16), fused path.
    B, C, H, W = 2, 32, 16, 16
    Cr = C // 16
    x = jax.random.normal(kx, (B, C, H, W), dtype=jnp.float32)
    # PyTorch nn.Linear weights in their native (out, in) layout.
    w1 = jax.random.normal(k1, (Cr, C), dtype=jnp.float32) * 0.1
    w2 = jax.random.normal(k2, (C, Cr), dtype=jnp.float32) * 0.1

    ref = _reference(x, w1, prelu_a, w2)
    out_fused = jax.block_until_ready(channel_attention(x, w1, prelu_a, w2))
    assert out_fused.shape == (B, C, H, W)
    assert jnp.allclose(out_fused, ref, atol=1e-5, rtol=1e-5), (
        float(jnp.max(jnp.abs(out_fused - ref))))

    # Case 2: force the two-pass path (pool+gate kernel, then aliased apply).
    out_tiled = jax.block_until_ready(
        channel_attention(x, w1, prelu_a, w2, block_budget_bytes=16 * 1024))
    assert out_tiled.shape == (B, C, H, W)
    assert jnp.allclose(out_tiled, ref, atol=1e-5, rtol=1e-5), (
        float(jnp.max(jnp.abs(out_tiled - ref))))

    # Case 3: spatial extent not a multiple of 128 with forced tiling so the
    # cdiv grid + masked-last-tile path is exercised (B=1, C=8, reduction=4).
    B3, C3, H3, W3 = 1, 8, 36, 36
    Cr3 = C3 // 4
    x3 = jax.random.normal(kx2, (B3, C3, H3, W3), dtype=jnp.float32)
    w1_3 = jax.random.normal(k1, (Cr3, C3), dtype=jnp.float32) * 0.1
    w2_3 = jax.random.normal(k2, (C3, Cr3), dtype=jnp.float32) * 0.1
    ref3 = _reference(x3, w1_3, prelu_a, w2_3)
    out3 = jax.block_until_ready(
        channel_attention(x3, w1_3, prelu_a, w2_3, block_budget_bytes=8 * 1024))
    assert out3.shape == (B3, C3, H3, W3)
    assert jnp.allclose(out3, ref3, atol=1e-5, rtol=1e-5), (
        float(jnp.max(jnp.abs(out3 - ref3))))

    print("KERNEL_OK")
</pallas_src>

<mosaic_0001>
module attributes {stable_mosaic.version = 11 : i64} {
  func.func @_fused_kernel(%arg0: i32, %arg1: memref<1x32x256xf32, #tpu.memory_space<vmem>>, %arg2: memref<2x32xf32, #tpu.memory_space<vmem>>, %arg3: memref<1x1xf32, #tpu.memory_space<smem>>, %arg4: memref<32x2xf32, #tpu.memory_space<vmem>>, %arg5: memref<1x32x256xf32, #tpu.memory_space<vmem>>) attributes {dimension_semantics = [#tpu.dimension_semantics<parallel>], iteration_bounds = array<i64: 2>, scalar_prefetch = 0 : i64, scratch_operands = 0 : i64, tpu.core_type = #tpu.core_type<tc>, window_params = [{transform_indices = @transform_0, window_bounds = array<i64: 1, 32, 256>}, {pipeline_mode = #tpu.pipeline_mode<synchronous>, transform_indices = @transform_1, window_bounds = array<i64: 2, 32>}, {transform_indices = @transform_2, window_bounds = array<i64: 1, 1>}, {pipeline_mode = #tpu.pipeline_mode<synchronous>, transform_indices = @transform_3, window_bounds = array<i64: 32, 2>}, {transform_indices = @transform_4, window_bounds = array<i64: 1, 32, 256>}]} {
    %c0 = arith.constant 0 : index
    %c0_0 = arith.constant 0 : index
    %c0_1 = arith.constant 0 : index
    %0 = vector.load %arg1[%c0, %c0_0, %c0_1] : memref<1x32x256xf32, #tpu.memory_space<vmem>>, vector<1x32x256xf32>
    %1 = vector.shape_cast %0 : vector<1x32x256xf32> to vector<32x256xf32>
    %cst = arith.constant dense<0.000000e+00> : vector<32xf32>
    %2 = vector.multi_reduction <add>, %1, %cst [1] : vector<32x256xf32> to vector<32xf32>
    %3 = vector.shape_cast %2 : vector<32xf32> to vector<32x1xf32>
    %cst_2 = arith.constant 3.906250e-03 : f32
    %4 = vector.broadcast %cst_2 : f32 to vector<32x1xf32>
    %5 = arith.mulf %3, %4 : vector<32x1xf32>
    %cst_3 = arith.constant dense<0xFF800000> : vector<32xf32>
    %6 = vector.multi_reduction <maximumf>, %1, %cst_3 [1] : vector<32x256xf32> to vector<32xf32>
    %7 = vector.shape_cast %6 : vector<32xf32> to vector<32x1xf32>
    %c0_4 = arith.constant 0 : index
    %c0_5 = arith.constant 0 : index
    %8 = vector.load %arg2[%c0_4, %c0_5] : memref<2x32xf32, #tpu.memory_space<vmem>>, vector<2x32xf32>
    %c0_6 = arith.constant 0 : index
    %c0_7 = arith.constant 0 : index
    %9 = vector.load %arg4[%c0_6, %c0_7] : memref<32x2xf32, #tpu.memory_space<vmem>>, vector<32x2xf32>
    %c0_8 = arith.constant 0 : index
    %c0_9 = arith.constant 0 : index
    %10 = memref.load %arg3[%c0_8, %c0_9] : memref<1x1xf32, #tpu.memory_space<smem>>
    %11 = tpu.iota {dimensions = array<i32: 1>} : vector<32x2xi32>
    %c0_i32 = arith.constant 0 : i32
    %12 = vector.broadcast %c0_i32 : i32 to vector<32x2xi32>
    %13 = arith.cmpi eq, %11, %12 : vector<32x2xi32>
    %14 = vector.shape_cast %5 : vector<32x1xf32> to vector<32x1xf32>
    %15 = vector.broadcast %14 : vector<32x1xf32> to vector<32x2xf32>
    %16 = vector.shape_cast %7 : vector<32x1xf32> to vector<32x1xf32>
    %17 = vector.broadcast %16 : vector<32x1xf32> to vector<32x2xf32>
    %18 = arith.select %13, %15, %17 : vector<32x2xi1>, vector<32x2xf32>
    %cst_10 = arith.constant dense<0.000000e+00> : vector<2x2xf32>
    %19 = tpu.matmul %8, %18, %cst_10 {dimension_numbers = #tpu.dot_dimension_numbers<[1], [0], [0], [1], [0, 0, 1, 1], [], []>} : vector<2x32xf32>, vector<32x2xf32>, vector<2x2xf32> -> vector<2x2xf32>
    %cst_11 = arith.constant 0.000000e+00 : f32
    %20 = vector.broadcast %cst_11 : f32 to vector<2x2xf32>
    %21 = arith.cmpf oge, %19, %20 : vector<2x2xf32>
    %22 = vector.broadcast %10 : f32 to vector<2x2xf32>
    %23 = arith.mulf %22, %19 : vector<2x2xf32>
    %24 = arith.select %21, %19, %23 : vector<2x2xi1>, vector<2x2xf32>
    %cst_12 = arith.constant dense<0.000000e+00> : vector<32x2xf32>
    %25 = tpu.matmul %9, %24, %cst_12 {dimension_numbers = #tpu.dot_dimension_numbers<[1], [0], [0], [1], [0, 0, 1, 1], [], []>} : vector<32x2xf32>, vector<2x2xf32>, vector<32x2xf32> -> vector<32x2xf32>
    %26 = vector.extract_strided_slice %25 {offsets = [0, 0], sizes = [32, 1], strides = [1, 1]} : vector<32x2xf32> to vector<32x1xf32>
    %27 = vector.extract_strided_slice %25 {offsets = [0, 1], sizes = [32, 1], strides = [1, 1]} : vector<32x2xf32> to vector<32x1xf32>
    %28 = arith.addf %26, %27 : vector<32x1xf32>
    %29 = arith.negf %28 : vector<32x1xf32>
    %30 = math.exp %29 : vector<32x1xf32>
    %cst_13 = arith.constant 1.000000e+00 : f32
    %31 = vector.broadcast %cst_13 : f32 to vector<32x1xf32>
    %32 = arith.addf %31, %30 : vector<32x1xf32>
    %33 = arith.divf %31, %32 : vector<32x1xf32>
    %34 = vector.broadcast %33 : vector<32x1xf32> to vector<32x256xf32>
    %35 = arith.mulf %1, %34 : vector<32x256xf32>
    %c0_14 = arith.constant 0 : index
    %c0_15 = arith.constant 0 : index
    %c0_16 = arith.constant 0 : index
    %36 = vector.load %arg5[%c0_14, %c0_15, %c0_16] : memref<1x32x256xf32, #tpu.memory_space<vmem>>, vector<1x32x256xf32>
    %37 = vector.shape_cast %36 : vector<1x32x256xf32> to vector<32x256xf32>
    %38 = vector.shape_cast %35 : vector<32x256xf32> to vector<1x32x256xf32>
    tpu.vector_store %arg5[%c0_14, %c0_15, %c0_16], %38 {strides = array<i32>} : memref<1x32x256xf32, #tpu.memory_space<vmem>>, vector<1x32x256xf32>,
    return
  }
  func.func @transform_0(%arg0: i32) -> (i32, i32, i32) {
    %c0_i32 = arith.constant 0 : i32
    %c0_i32_0 = arith.constant 0 : i32
    %c0_i32_1 = arith.constant 0 : i32
    return %arg0, %c0_i32, %c0_i32_0 : i32, i32, i32
  }
  func.func @transform_1(%arg0: i32) -> (i32, i32) {
    %c0_i32 = arith.constant 0 : i32
    %c0_i32_0 = arith.constant 0 : i32
    %c0_i32_1 = arith.constant 0 : i32
    return %c0_i32, %c0_i32_0 : i32, i32
  }
  func.func @transform_2(%arg0: i32) -> (i32, i32) {
    %c0_i32 = arith.constant 0 : i32
    %c0_i32_0 = arith.constant 0 : i32
    %c0_i32_1 = arith.constant 0 : i32
    return %c0_i32, %c0_i32_0 : i32, i32
  }
  func.func @transform_3(%arg0: i32) -> (i32, i32) {
    %c0_i32 = arith.constant 0 : i32
    %c0_i32_0 = arith.constant 0 : i32
    %c0_i32_1 = arith.constant 0 : i32
    return %c0_i32, %c0_i32_0 : i32, i32
  }
  func.func @transform_4(%arg0: i32) -> (i32, i32, i32) {
    %c0_i32 = arith.constant 0 : i32
    %c0_i32_0 = arith.constant 0 : i32
    %c0_i32_1 = arith.constant 0 : i32
    return %arg0, %c0_i32, %c0_i32_0 : i32, i32, i32
  }
}

</mosaic_0001>

<bundles_post_ra>
// kernel: tpu_custom_call.1
= control target key start
LH: loop header
LB: loop body
LE: loop exit
PB: predicated region body
PF: predicated region fallthrough
CT: control target
= control target key end

     0   :  { %s1093_s0 = inlined_call_operand.hbm [shape: f32[2,32,256], index: 0, kind: input, shape index: {}, may-alias: {0,4}]   ;;  %s1094_s1 = inlined_call_operand.vmem [shape: f32[2,32], index: 1, kind: input, shape index: {}]   ;;  %s1095_s2 = inlined_call_operand.<no memory space> [shape: f32[1,1], index: 2, kind: input, shape index: {}]   ;;  %s1096_s3 = inlined_call_operand.vmem [shape: f32[32,2], index: 3, kind: input, shape index: {}]   ;;  %s1097_s4 = inlined_call_operand.hbm [shape: f32[2,32,256], index: 4, kind: output, shape index: {}, may-alias: {0,4}]  }
   0x1   :  { %9 = sst [smem:[#allocation2]] %s1095_s2 }
   0x2   :  { %10 = vsyncpa [#allocation4], 0 }
   0x3   :  { %12 = vsyncpa [#allocation4 + $0x1], 0 }
   0x4   :  { %13 = vsyncpa [#allocation5], 0 }
   0x5   :  { %15 = vsyncpa [#allocation5 + $0x1], 0  ;;  %s872_s17 = smov 0   ;;  %s874_s18 = smov 0  }
   0x6   :  { %s876_s19 = smov 0   ;;  %s878_s20 = smov 0  }
   0x7 LB: > { %s893_s2 = sadd.s32 4294967295, %s832_s20   ;;  %s613_s21 = sadd.s32 4294967294, %s832_s20   ;;  %s832_s20 = sphi %s878_s20, %s1112_s20   ;;  %s828_s19 = sphi %s876_s19, %s1111_s19   ;;  %s824_s18 = sphi %s874_s18, %s1110_s18   ;;  %s820_s17 = sphi %s872_s17, %s1109_s17  }
   0x8   : > { %s897_s22 = sadd.s32 1, %s832_s20   ;;  %s28_s23 = sadd.s32 1, %s828_s19 }
   0x9   : > { %s25_s24 = ssub.s32 %s832_s20, %s897_s22  ;;  %p35_p0 = scmp.ne.s32.totalorder %s828_s19, %s824_s18 }
   0xa   : > { %p26_p1 = scmp.eq.s32.totalorder %s25_s24, 0  ;;  %p36_p2 = scmp.eq.s32.totalorder %s832_s20, 0 }
   0xb   : > { %p41_p3 = scmp.ne.s32.totalorder %s824_s18, %s820_s17  ;;  %p42_p4 = scmp.eq.s32.totalorder %s893_s2, 0 }
   0xc   : > { %s909_s25 = scalar_select %p26_p1, %s828_s19, %s28_s23  }
   0xd   : > { %p911_p5 = por %p36_p2, %p35_p0  ;;  %p915_p6 = por %p42_p4, %p41_p3 }
   0xe   : > { %p128_p7 = scmp.eq.s32.totalorder %s893_s2, 1  ;;  %p134_p8 = scmp.eq.s32.totalorder %s613_s21, 1 }
   0xf   : > { %s1101_s27 = scalar_select %p915_p6, 1, 0 }
  0x10   : > { %p680_p10 = scmp.lt.s32.totalorder %s832_s20, 2  ;;  %p922_p11 = por %p128_p7, %p35_p0 }
  0x11   : > { %p926_p12 = por %p134_p8, %p41_p3  ;;  %s163_s30 = sand.u32 1, %s828_s19  }
  0x12   : > { %s1102_s28 = scalar_select %p922_p11, 1, 0 }
  0x13   : > { %s1103_s29 = scalar_select %p926_p12, 1, 0 }
  0x14   : > { %s637_s5 = sshll.u32 %s832_s20, 10  ;;  %s616_s6 = sshll.u32 %s163_s30, 6 }
  0x15   : > { %s935_s9 = scalar_lea.hbm %s1093_s0, %s637_s5  ;;  %s167_s10 = scalar_lea.vmem [#allocation3], %s616_s6 }
  0x16   : > { %s174_s11 = sshll.u32 %s167_s10, 4  ;;  %p939_p13 = pnand %p680_p10, %p911_p5  ;;  %s943_s11 = int_to_ptr.vmem [resolvable:$true] %s174_s11 }
  0x17   : > { %s945_s13 = scalar_lea.sflag [#allocation4], %s163_s30  ;;  %s740_s14 = scalar_lea.hbm %s935_s9, 1024 }
  0x18   : > { %p741_p0 = scmp.ne.s32.totalorder %s935_s9, %s740_s14  ;;  %p742_p1 = pneg %p939_p13 }
  0x19   : > { %s745_s21 = scalar_lea.hbm %s1093_s0, 2048  ;;  %p746_p4 = scmp.lt.s32.totalorder %s935_s9, %s1093_s0 }
  0x1a   : > { %p743_p2 = pnand %p742_p1, %p741_p0  ;;  %p747_p5 = scmp.lt.s32.totalorder %s745_s21, %s740_s14 }
  0x1c   : > { %p744_p3 = pneg %p743_p2  ;;  %p748_p7 = por %p747_p5, %p746_p4 }
  0x1e   : > { %p749_p8 = pnand %p748_p7, %p744_p3 }
  0x20   : > { %752 = shalt.err (!%p749_p8)
}
  0x21   : > { %s753_s26 = scalar_lea.vmem %s943_s11, 1024  ;;  %s834_s30 = smov [#allocation3]  }
  0x22   : > { %p754_p10 = scmp.ne.s32.totalorder %s943_s11, %s753_s26  ;;  %s758_s5 = sshll.u32 %s834_s30, 4  ;;  %s759_s5 = int_to_ptr.vmem [resolvable:$false] %s758_s5 }
  0x23   : > { %s760_s6 = scalar_lea.vmem %s759_s5, 2048  ;;  %p761_p2 = scmp.lt.s32.totalorder %s943_s11, %s759_s5 }
  0x24   : > { %p756_p9 = pnand %p754_p10, %p742_p1  ;;  %p762_p12 = scmp.lt.s32.totalorder %s760_s6, %s753_s26 }
  0x26   : > { %p757_p0 = pneg %p756_p9  ;;  %p763_p11 = por %p762_p12, %p761_p2 }
  0x28   : > { %p764_p6 = pnand %p763_p11, %p757_p0 }
  0x2a   : > { %767 = shalt.err (!%p764_p6)
}
  0x2b   : > { %s835_s7 = smov 256   ;;  %s836_s8 = smov 16  }
  0x2c   : > { %675 = dma.hbm_to_vmem [thread:$0]  (!%p939_p13), %s935_s9, 1024, %s943_s11, %s945_s13, %s835_s7, %s835_s7, %s836_s8  }
  0x2d   : > { %p619_p9 = scmp.ge.s32.totalorder %s832_s20, 1  ;;  %p182_p1 = scmp.lt.s32.totalorder %s832_s20, 3 }
  0x2f   : > { %p183_p3 = pnand %p619_p9, %p182_p1 }
  0x30   : > { %s969_s10 = sand.u32 (!%p183_p3), 1, %s824_s18   ;;  %p1105_p6 = scmp.ne.s32.totalorder (!%p183_p3), %s1101_s27, 0 }
  0x31   : > { %186 = sbr.rel (%p183_p3) target bundleno = 902 (0x386), region = 36  ;;  %s620_s14 = sshll.u32 (!%p183_p3), %s969_s10, 6 }
  0x32   : > { %s189_s15 = scalar_lea.sflag (!%p183_p3), [#allocation4], %s969_s10  ;;  %s192_s16 = scalar_lea.vmem (!%p183_p3), [#allocation3], %s620_s14 }
  0x36   : > { %811 = dma.done.wait (%p1105_p6), %s189_s15, 1024  }
  0x37   : > { %813 = vsyncadd (%p1105_p6), %s189_s15, 4294966272  ;;  %v979_v0 = vld [vmem:[%s192_s16 + $0x30] sm:$0xff]  ;;  %v981_v1 = vld [vmem:[%s192_s16 + $0x38] sm:$0xff]  ;;  %v837_v16 = vmov 0.0   ;;  %vm838_vm0 = vmmov 0   ;;  %v259_v17 = vlaneseq  ;;  %vm266_vm2 = vcmask 261120  }
  0x38   : > { %v983_v2 = vld [vmem:[%s192_s16 + $0x20] sm:$0xff]  ;;  %v250_v3 = vmax.f32 %v979_v0, %v981_v1  ;;  %v234_v4 = vadd.f32 %v981_v1, %v979_v0  ;;  %v989_v5 = vld [vmem:[%s192_s16 + $0x28] sm:$0xff]  ;;  %v991_v6 = vld [vmem:[%s192_s16 + $0x10] sm:$0xff]  ;;  %649 = vmatprep.subr.mxu0 %v837_v16  ;;  %657 = vmatprep.mubr.msk.f32.mxu0 %vm838_vm0, %v837_v16  ;;  %vm344_vm3 = vcmask 15360   ;;  %s258_s13 = sld [smem:[#allocation2]]  ;;  %vm357_vm5 = vcmask 1041408  }
  0x39   : > { %v993_v7 = vld [vmem:[%s192_s16 + $0x18] sm:$0xff]  ;;  %v231_v8 = vadd.f32 %v989_v5, %v983_v2  ;;  %v999_v10 = vld [vmem:[%s192_s16] sm:$0xff]  ;;  %v1001_v11 = vld [vmem:[%s192_s16 + $0x8] sm:$0xff]  ;;  %v247_v12 = vmax.f32 %v983_v2, %v989_v5  ;;  %v260_v18 = vand.u32 127, %v259_v17  ;;  %s839_s6 = smov 127   ;;  %v840_v49 = vmov 0  }
  0x3a   : > { %251 = vmax.xlane.f32.xlu1 %v250_v3  ;;  %235 = vadd.xlane.f32.xlu0 %v234_v4  ;;  %v228_v9 = vadd.f32 %v993_v7, %v991_v6  ;;  %v225_v13 = vadd.f32 %v1001_v11, %v999_v10  ;;  %v244_v14 = vmax.f32 %v991_v6, %v993_v7  ;;  %v253_v34 = vld [vmem:[%s1094_s1] sm:$0x3]  ;;  %v255_v42 = vld [vmem:[%s1096_s3 + $0x8] sm:$0xff]  ;;  %v256_v43 = vld [vmem:[%s1096_s3 + $0x10] sm:$0xff]  ;;  %s216_s7 = scalar_lea.vmem [#allocation6], %s620_s14  ;;  %s638_s15 = sshll.u32 %s893_s2, 10 }
  0x3b   : > { %v241_v15 = vmax.f32 %v999_v10, %v1001_v11  ;;  %vm261_vm1 = vcmp.eq.s32.totalorder %v260_v18, 0  ;;  %v254_v36 = vld [vmem:[%s1096_s3] sm:$0xff]  ;;  %v257_v44 = vld [vmem:[%s1096_s3 + $0x18] sm:$0xff]  ;;  %722 = vset.pattern.permute.xlu1 %v840_v49  ;;  %723 = vset.pattern.permute.xlu0 %v840_v49  ;;  %s540_s8 = sshll.u32 %s216_s7, 4  ;;  %s1048_s27 = scalar_lea.hbm %s1097_s4, %s638_s15  ;;  %s1043_s8 = int_to_ptr.vmem [resolvable:$true] %s540_s8 }
  0x3c   : > { %662 = vmatprep.mubr.msk.f32.mxu1 %vm344_vm3, %v254_v36  ;;  %s527_s2 = scalar_lea.sflag [#allocation5], %s969_s10  ;;  %s768_s9 = scalar_lea.vmem %s1043_s8, 1024 }
  0x3d   : > { %p769_p11 = scmp.ne.s32.totalorder %s1043_s8, %s768_s9  ;;  %p1106_p12 = scmp.ne.s32.totalorder %s1102_s28, 0 }
  0x3e   : > { %232 = vadd.xlane.f32.xlu0 %v231_v8  ;;  %229 = vadd.xlane.f32.xlu1 %v228_v9  ;;  %v341_v37 = vstv %s258_s13  ;;  %s841_s11 = smov [#allocation6]  }
  0x3f   : > { %p770_p13 = pnand %p769_p11, %p1106_p12  ;;  %s772_s12 = sshll.u32 %s841_s11, 4  ;;  %s773_s12 = int_to_ptr.vmem [resolvable:$false] %s772_s12 }
  0x40   : > { %s774_s13 = scalar_lea.vmem %s773_s12, 2048  ;;  %p775_p5 = scmp.lt.s32.totalorder %s1043_s8, %s773_s12 }
  0x41   : > { %p771_p4 = pneg %p770_p13  ;;  %p776_p7 = scmp.lt.s32.totalorder %s774_s13, %s768_s9 }
  0x42   : > { %248 = vmax.xlane.f32.xlu0 %v247_v12  ;;  %226 = vadd.xlane.f32.xlu1 %v225_v13 }
  0x43   : > { %p777_p8 = por %p776_p7, %p775_p5 }
  0x45   : > { %p778_p10 = pnand %p777_p8, %p771_p4 }
  0x46   : > { %245 = vmax.xlane.f32.xlu0 %v244_v14  ;;  %242 = vmax.xlane.f32.xlu1 %v241_v15 }
  0xc3   : > { %v252_v19 = vpop.xlane.xlu1 %251  ;;  %v236_v20 = vpop.xlane.xlu0 %235 }
  0xc4   : > { %v240_v21 = vmul.f32 0.00390625, %v236_v20 }
  0xc6   : > { %v265_v22 = vsel %vm261_vm1, %v240_v21, %v252_v19 }
  0xc7   : > { %650 = vmatpush3.msra.mxu0 %v265_v22  ;;  %v233_v23 = vpop.xlane.xlu0 %232  ;;  %v230_v24 = vpop.xlane.xlu1 %229 }
  0xc8   : > { %651 = vmatprep.subr.mxu0 %v837_v16  ;;  %v239_v25 = vmul.f32 0.00390625, %v233_v23  ;;  %v238_v29 = vmul.f32 0.00390625, %v230_v24 }
  0xcb   : > { %v249_v26 = vpop.xlane.xlu0 %248  ;;  %v227_v27 = vpop.xlane.xlu1 %226 }
  0xcc   : > { %v264_v28 = vsel %vm261_vm1, %v239_v25, %v249_v26  ;;  %v237_v30 = vmul.f32 0.00390625, %v227_v27 }
  0xcd   : > { %652 = vmatpush3.msra.mxu0 %v264_v28 }
  0xce   : > { %653 = vmatprep.subr.mxu0 %v837_v16 }
  0xcf   : > { %v246_v31 = vpop.xlane.xlu0 %245  ;;  %v243_v32 = vpop.xlane.xlu1 %242 }
  0xd0   : > { %v263_v33 = vsel %vm261_vm1, %v238_v29, %v246_v31  ;;  %v262_v35 = vsel %vm261_vm1, %v237_v30, %v243_v32 }
  0xd1   : > { %654 = vmatpush3.msra.mxu0 %v263_v33 }
  0xd2   : > { %655 = vmatprep.subr.mxu0 %v837_v16 }
  0xd3   : > { %656 = vmatpush3.msra.mxu0 %v262_v35 }
  0xd4   : > { %658 = vmatmul.mubr.msk.f32.vlgmr.msra.gmra.mxu0 %vm266_vm2, %v253_v34 }
 0x194   : > { %v336_v38 = vpop.f32.mrf.mxu0 }
 0x195   : > { %v342_v39 = vmul.f32 %v341_v37, %v336_v38  ;;  %vm340_vm4 = vcmp.ge.f32.partialorder %v336_v38, 0.0 }
 0x196   : > { %v659_v40 = vpop.f32.mrf.mxu0 }
 0x197   : > { %v343_v41 = vsel %vm340_vm4, %v336_v38, %v342_v39 }
 0x198   : > { %660 = vmatprep.subr.msk.mxu1 %vm357_vm5, %v343_v41 }
 0x199   : > { %661 = vmatpush3.msk.msra.mxu1 %vm357_vm5, %v343_v41 }
 0x19a   : > { %663 = vmatmul.mubr.msk.f32.vlgmr.msra.gmra.mxu1 %vm344_vm3, %v255_v42 }
 0x19b   : > { %665 = vmatprep.mubr.msk.f32.mxu1 %vm344_vm3, %v256_v43 }
 0x19e   : > { %666 = vmatmul.mubr.msk.f32.gmra.mxu1 %vm344_vm3, %v257_v44 }
 0x25a   : > { %v664_v45 = vpop.f32.mrf.mxu1 }
 0x25b   : > { %452 = vrot.lane.b32.xlu1 %v664_v45, %s839_s6 }
 0x25c   : > { %v427_v46 = vpop.f32.mrf.mxu1 }
 0x25d   : > { %450 = vrot.lane.b32.xlu0 %v427_v46, %s839_s6 }
 0x25e   : > { %v667_v47 = vpop.f32.mrf.mxu1 }
 0x260   : > { %v437_v48 = vpop.f32.mrf.mxu1 }
 0x261   : > { %454 = vrot.lane.b32.xlu1 %v437_v48, %s839_s6 }
 0x265   : > { %456 = vrot.lane.b32.xlu1 %v667_v47, %s839_s6 }
 0x2cd   : > { %v453_v50 = vpop.permute.xlu1 %452 }
 0x2ce   : > { %v463_v51 = vadd.f32 %v664_v45, %v453_v50 }
 0x2cf   : > { %v451_v52 = vpop.permute.xlu0 %450 }
 0x2d0   : > { %v629_v53 = vmul.f32 -1.442695, %v463_v51  ;;  %v462_v54 = vadd.f32 %v451_v52, %v427_v46 }
 0x2d2   : > { %724 = vpow2.f32 %v629_v53  ;;  %v628_v55 = vmul.f32 -1.442695, %v462_v54 }
 0x2d3   : > { %v455_v56 = vpop.permute.xlu1 %454 }
 0x2d4   : > { %726 = vpow2.f32 %v628_v55  ;;  %v464_v57 = vadd.f32 %v455_v56, %v437_v48 }
 0x2d6   : > { %v630_v58 = vmul.f32 -1.442695, %v464_v57 }
 0x2d7   : > { %v457_v59 = vpop.permute.xlu1 %456 }
 0x2d8   : > { %728 = vpow2.f32 %v630_v58  ;;  %v465_v60 = vadd.f32 %v667_v47, %v457_v59 }
 0x2da   : > { %v631_v61 = vmul.f32 -1.442695, %v465_v60 }
 0x2dc   : > { %730 = vpow2.f32 %v631_v61 }
 0x2df   : > { %v725_v62 = vpop.eup %724 }
 0x2e0   : > { %v479_v63 = vadd.f32 1.0, %v725_v62 }
 0x2e1   : > { %v727_v3 = vpop.eup %726 }
 0x2e2   : > { %732 = vrcp.f32 %v479_v63  ;;  %v478_v4 = vadd.f32 1.0, %v727_v3 }
 0x2e4   : > { %734 = vrcp.f32 %v478_v4 }
 0x2e5   : > { %v729_v8 = vpop.eup %728 }
 0x2e6   : > { %v480_v9 = vadd.f32 1.0, %v729_v8 }
 0x2e8   : > { %736 = vrcp.f32 %v480_v9 }
 0x2e9   : > { %v731_v12 = vpop.eup %730 }
 0x2ea   : > { %v481_v13 = vadd.f32 1.0, %v731_v12 }
 0x2ec   : > { %738 = vrcp.f32 %v481_v13 }
 0x2ef   : > { %v733_v14 = vpop.eup %732 }
 0x2f0   : > { %497 = vperm.xlu1 %722, %v733_v14  }
 0x2f1   : > { %v735_v15 = vpop.eup %734 }
 0x2f2   : > { %492 = vperm.xlu0 %723, %v735_v15  }
 0x2f5   : > { %v737_v16 = vpop.eup %736 }
 0x2f6   : > { %502 = vperm.xlu1 %722, %v737_v16  }
 0x2f9   : > { %v739_v17 = vpop.eup %738 }
 0x2fa   : > { %507 = vperm.xlu0 %723, %v739_v17  }
 0x36b   : > { %v498_v18 = vpop.permute.xlu1 %497 }
 0x36c   : > { %v512_v19 = vmul.f32 %v498_v18, %v991_v6  ;;  %v513_v20 = vmul.f32 %v498_v18, %v993_v7 }
 0x36d   : > { %v493_v21 = vpop.permute.xlu0 %492 }
 0x36e   : > { %520 = vst [vmem:[%s216_s7 + $0x10] sm:$0xff] %v512_v19  ;;  %521 = vst [vmem:[%s216_s7 + $0x18] sm:$0xff] %v513_v20  ;;  %v510_v22 = vmul.f32 %v493_v21, %v999_v10  ;;  %v511_v23 = vmul.f32 %v493_v21, %v1001_v11 }
 0x370   : > { %518 = vst [vmem:[%s216_s7] sm:$0xff] %v510_v22  ;;  %519 = vst [vmem:[%s216_s7 + $0x8] sm:$0xff] %v511_v23 }
 0x371   : > { %v503_v24 = vpop.permute.xlu1 %502 }
 0x372   : > { %v514_v25 = vmul.f32 %v503_v24, %v983_v2  ;;  %v515_v6 = vmul.f32 %v503_v24, %v989_v5 }
 0x374   : > { %522 = vst [vmem:[%s216_s7 + $0x20] sm:$0xff] %v514_v25  ;;  %523 = vst [vmem:[%s216_s7 + $0x28] sm:$0xff] %v515_v6 }
 0x375   : > { %v508_v7 = vpop.permute.xlu0 %507 }
 0x376   : > { %v516_v10 = vmul.f32 %v508_v7, %v979_v0  ;;  %v517_v2 = vmul.f32 %v508_v7, %v981_v1 }
 0x378   : > { %524 = vst [vmem:[%s216_s7 + $0x30] sm:$0xff] %v516_v10  ;;  %525 = vst [vmem:[%s216_s7 + $0x38] sm:$0xff] %v517_v2 }
 0x379   : > { %781 = shalt.err (!%p778_p10)
}
 0x37a   : > { %s782_s21 = scalar_lea.hbm %s1048_s27, 1024  ;;  %s786_s26 = scalar_lea.hbm %s1097_s4, 2048 }
 0x37b   : > { %p783_p0 = scmp.ne.s32.totalorder %s1048_s27, %s782_s21  ;;  %p787_p1 = scmp.lt.s32.totalorder %s1048_s27, %s1097_s4 }
 0x37c   : > { %p788_p3 = scmp.lt.s32.totalorder %s786_s26, %s782_s21 }
 0x37d   : > { %p784_p2 = pnand %p783_p0, %p1106_p12 }
 0x37e   : > { %p789_p6 = por %p788_p3, %p787_p1 }
 0x37f   : > { %p785_p9 = pneg %p784_p2 }
 0x381   : > { %p790_p11 = pnand %p789_p6, %p785_p9 }
 0x383   : > { %793 = shalt.err (!%p790_p11)
}
 0x384   : > { %s842_s6 = smov 256   ;;  %s843_s7 = smov 16  }
 0x385   : > { %670 = dma.vmem_to_hbm [thread:$0]  (%p1106_p12), %s1043_s8, 1024, %s1048_s27, %s527_s2, %s842_s6, %s842_s6, %s843_s7  }
 0x386 PF: > { %s555_s15 = sand.u32 1, %s820_s17   ;;  %p1107_p13 = scmp.ne.s32.totalorder %s1103_s29, 0 }
 0x387   : > { %p1108_p4 = scmp.ge.s32.totalorder %s832_s20, 2  ;;  %s556_s14 = scalar_lea.sflag [#allocation5], %s555_s15 }
 0x389   : > { %p677_p5 = pnand %p1108_p4, %p1107_p13 }
 0x38b   : > { %p678_p7 = pneg %p677_p5 }
 0x38d   : > { %815 = dma.done.wait (%p678_p7), %s556_s14, 1024  }
 0x38e   : > { %817 = vsyncadd (%p678_p7), %s556_s14, 4294966272  ;;  %p18_p8 = scmp.ge.s32.totalorder %s897_s22, 4   ;;  %s1109_s17 = smov %s824_s18 }
 0x38f   : > { %s1110_s18 = smov %s828_s19  ;;  %s1111_s19 = smov %s909_s25 }
 0x390   : > { %s1112_s20 = smov %s897_s22  ;;  %20 = sbr.rel (!%p18_p8) target bundleno = 7 (0x7), region = 81 }
 0x395   :  { %561 = vsyncpa [#allocation4], 1 }
 0x396   :  { %563 = vsyncpa [#allocation4 + $0x1], 1 }
 0x397   :  { %564 = vsyncpa [#allocation5], 1 }
 0x398   :  { %566 = vsyncpa [#allocation5 + $0x1], 1 }

</bundles_post_ra>
